<compile_context>
chip_gen: v5e
topology: v5e:2x2
jax: 0.10.0
libtpu: 0.0.40
codegen_flags: <defaults>
</compile_context>

<pallas_src>
import math

import jax
import jax.numpy as jnp
import numpy as np
from jax.experimental import pallas as pl
from jax.experimental.pallas import tpu as pltpu

LOG_2PI = math.log(2.0 * math.pi)


# ----------------------------------------------------------------------------
# Fused Pallas kernel (actor MLP + critic MLP + diag-MVN sample/logprob/entropy)
# ----------------------------------------------------------------------------
def _make_fused_kernel(n_mid, action_dim, out_width_padded):
    A = action_dim
    kf = float(A)

    def kernel(xa_ref, xc_ref, eps_ref,
               wf_ref, bf_ref, wm_ref, bm_ref, wl_ref, bl_ref,
               out_ref):
        # Fused input: [B, Da + Dc]; weights are block-diagonal so the actor
        # half and critic half never mix.
        h = jnp.concatenate([xa_ref[...], xc_ref[...]], axis=-1)

        # first layer
        h = jnp.tanh(jnp.dot(h, wf_ref[...],
                             preferred_element_type=jnp.float32) + bf_ref[...])
        # hidden layers (stacked params, static unrolled loop)
        for i in range(n_mid):
            h = jnp.tanh(jnp.dot(h, wm_ref[i],
                                 preferred_element_type=jnp.float32) + bm_ref[i])
        # last layer (no activation): [B, 2A + 1] = [actor_means, actor_vars_raw, value]
        out = jnp.dot(h, wl_ref[...],
                      preferred_element_type=jnp.float32) + bl_ref[...]

        means = out[:, :A]
        var_raw = out[:, A:2 * A]
        value = out[:, 2 * A:2 * A + 1]

        # torch.clamp_min((v + 1) / 2, 1e-8)
        variances = jnp.maximum((var_raw + 1.0) * 0.5, 1e-8)
        std = jnp.sqrt(variances)
        inv_var = pl.reciprocal(variances, approx=False)   # exact; reused below

        eps = eps_ref[...]
        action = means + std * eps                          # dist.sample()

        # MultivariateNormal(means, diag(variances)).log_prob(action)
        diff = action - means
        quad = jnp.sum(diff * diff * inv_var, axis=-1, keepdims=True)
        logdet = jnp.sum(jnp.log(variances), axis=-1, keepdims=True)
        logprob = -0.5 * (quad + logdet + kf * LOG_2PI)

        # dist.entropy() for diagonal MVN
        entropy = 0.5 * kf * (1.0 + LOG_2PI) + 0.5 * logdet

        # single lane-dense output slab:
        # [action (A) | means (A) | variances (A) | logprob (1) | entropy (1) | value (1) | pad]
        pad_cols = out_width_padded - (3 * A + 3)
        zpad = jnp.zeros((action.shape[0], pad_cols), dtype=jnp.float32)
        out_ref[...] = jnp.concatenate(
            [action, means, variances, logprob, entropy, value, zpad], axis=-1)

    return kernel


# ----------------------------------------------------------------------------
# Wrapper
# ----------------------------------------------------------------------------
def _vmem_spec():
    return pl.BlockSpec(memory_space=pltpu.MemorySpace.VMEM)


def actor_critic_forward(x_actor, x_critic, eps, fused_params, action_dim):
    """Single fused pallas_call.

    Returns (action, logprob, entropy, means, variances, value)."""
    wf, bf, wm, bm, wl, bl = fused_params
    B = x_actor.shape[0]
    A = action_dim
    out_w = 3 * A + 3
    out_pad = 128 if out_w <= 128 else ((out_w + 127) // 128) * 128
    n_mid = int(wm.shape[0]) if wm.ndim == 3 else 0

    kernel = _make_fused_kernel(n_mid, A, out_pad)
    out = pl.pallas_call(
        kernel,
        out_shape=jax.ShapeDtypeStruct((B, out_pad), jnp.float32),
        in_specs=[_vmem_spec() for _ in range(9)],
        out_specs=_vmem_spec(),
    )(x_actor, x_critic, eps, wf, bf, wm, bm, wl, bl)

    action = out[:, 0:A]
    means = out[:, A:2 * A]
    variances = out[:, 2 * A:3 * A]
    logprob = out[:, 3 * A:3 * A + 1]
    entropy = out[:, 3 * A + 1:3 * A + 2]
    value = out[:, 3 * A + 2:3 * A + 3]
    return action, logprob, entropy, means, variances, value


# ----------------------------------------------------------------------------
# Parameter packing: block-diagonal fused weights, stacked hidden layers
# ----------------------------------------------------------------------------
def pack_fused_params(actor_params, critic_params):
    """actor_params / critic_params: lists of (W [in,out], b [1,out]).

    Returns (W_first, b_first, W_mid_stack, b_mid_stack, W_last, b_last) with
    block-diagonal fusion: actor block top-left, critic block bottom-right."""
    L = len(actor_params)
    assert len(critic_params) == L and L >= 2

    a_w = [np.asarray(w, np.float32) for w, _ in actor_params]
    a_b = [np.asarray(b, np.float32).reshape(-1) for _, b in actor_params]
    c_w = [np.asarray(w, np.float32) for w, _ in critic_params]
    c_b = [np.asarray(b, np.float32).reshape(-1) for _, b in critic_params]

    def block_diag(wa, wc):
        out = np.zeros((wa.shape[0] + wc.shape[0], wa.shape[1] + wc.shape[1]),
                       np.float32)
        out[:wa.shape[0], :wa.shape[1]] = wa
        out[wa.shape[0]:, wa.shape[1]:] = wc
        return out

    wf = block_diag(a_w[0], c_w[0])
    bf = np.concatenate([a_b[0], c_b[0]])[None, :]

    n_mid = L - 2
    h2 = a_w[1].shape[0] + c_w[1].shape[0]
    wm = np.zeros((max(n_mid, 1), h2, h2), np.float32)
    bm = np.zeros((max(n_mid, 1), 1, h2), np.float32)
    for i in range(n_mid):
        wm[i] = block_diag(a_w[i + 1], c_w[i + 1])
        bm[i, 0] = np.concatenate([a_b[i + 1], c_b[i + 1]])

    wl = block_diag(a_w[-1], c_w[-1])
    bl = np.concatenate([a_b[-1], c_b[-1]])[None, :]

    return tuple(jnp.asarray(x) for x in (wf, bf, wm, bm, wl, bl))


# ----------------------------------------------------------------------------
# Deterministic parameter init (PyTorch weights_init_uniform_rule)
# ----------------------------------------------------------------------------
def init_mlp(key, dims):
    """dims = [d0, d1, ..., dL]; returns list of (W [in,out], b [1,out])."""
    params = []
    for i in range(len(dims) - 1):
        key, sub = jax.random.split(key)
        fan_in, fan_out = dims[i], dims[i + 1]
        y = 1.0 / math.sqrt(fan_in)
        w = jax.random.uniform(sub, (fan_in, fan_out), dtype=jnp.float32,
                               minval=-y, maxval=y)
        b = jnp.zeros((1, fan_out), dtype=jnp.float32)  # bias filled with 0
        params.append((w, b))
    return params


# ----------------------------------------------------------------------------
# Pure-JAX reference for correctness check
# ----------------------------------------------------------------------------
def _ref_mlp(x, params):
    h = x
    for i, (w, b) in enumerate(params):
        h = h @ w + b
        if i != len(params) - 1:
            h = jnp.tanh(h)
    return h


def _ref_act(x, eps, actor_params, action_dim):
    out = _ref_mlp(x, actor_params)
    means = out[:, :action_dim]
    variances = jnp.maximum((out[:, action_dim:] + 1.0) * 0.5, 1e-8)
    std = jnp.sqrt(variances)
    action = means + std * eps
    k = float(action_dim)
    diff = action - means
    quad = jnp.sum(diff * diff / variances, axis=-1, keepdims=True)
    logdet = jnp.sum(jnp.log(variances), axis=-1, keepdims=True)
    logprob = -0.5 * (quad + logdet + k * LOG_2PI)
    entropy = 0.5 * k * (1.0 + LOG_2PI) + 0.5 * logdet
    return action, logprob, entropy, means, variances


# ----------------------------------------------------------------------------
# Main
# ----------------------------------------------------------------------------
if __name__ == "__main__":
    key = jax.random.PRNGKey(0)

    batch = 4
    actor_obs_dim = 32
    critic_obs_dim = 32
    action_dim = 4
    hidden = 32
    depth = 8  # number of Linear layers in each MLP

    # actor: obs -> hidden x (depth-1) -> 2*action_dim
    actor_dims = [actor_obs_dim] + [hidden] * (depth - 1) + [2 * action_dim]
    # critic: obs -> hidden x (depth-1) -> 1
    critic_dims = [critic_obs_dim] + [hidden] * (depth - 1) + [1]

    key, k_a, k_c, k_x, k_xc, k_eps = jax.random.split(key, 6)
    actor_params = init_mlp(k_a, actor_dims)
    critic_params = init_mlp(k_c, critic_dims)
    fused_params = pack_fused_params(actor_params, critic_params)

    obs_actor = jax.random.normal(k_x, (batch, actor_obs_dim), dtype=jnp.float32)
    obs_critic = jax.random.normal(k_xc, (batch, critic_obs_dim), dtype=jnp.float32)
    eps = jax.random.normal(k_eps, (batch, action_dim), dtype=jnp.float32)

    # Fused Pallas kernel (actor act + critic value in one call)
    action, logprob, entropy, means, variances, values = actor_critic_forward(
        obs_actor, obs_critic, eps, fused_params, action_dim)
    jax.block_until_ready((action, logprob, entropy, means, variances, values))

    # Reference check
    r_action, r_logprob, r_entropy, r_means, r_vars = _ref_act(
        obs_actor, eps, actor_params, action_dim)
    r_values = _ref_mlp(obs_critic, critic_params)

    np.testing.assert_allclose(np.asarray(action), np.asarray(r_action), rtol=1e-5, atol=1e-5)
    np.testing.assert_allclose(np.asarray(logprob), np.asarray(r_logprob), rtol=1e-5, atol=1e-5)
    np.testing.assert_allclose(np.asarray(entropy), np.asarray(r_entropy), rtol=1e-5, atol=1e-5)
    np.testing.assert_allclose(np.asarray(means), np.asarray(r_means), rtol=1e-5, atol=1e-5)
    np.testing.assert_allclose(np.asarray(variances), np.asarray(r_vars), rtol=1e-5, atol=1e-5)
    np.testing.assert_allclose(np.asarray(values), np.asarray(r_values), rtol=1e-5, atol=1e-5)

    print("KERNEL_OK")
</pallas_src>

<mosaic_0001>
module attributes {stable_mosaic.version = 11 : i64} {
  func.func @kernel(%arg0: memref<4x32xf32, #tpu.memory_space<vmem>>, %arg1: memref<4x32xf32, #tpu.memory_space<vmem>>, %arg2: memref<4x4xf32, #tpu.memory_space<vmem>>, %arg3: memref<64x64xf32, #tpu.memory_space<vmem>>, %arg4: memref<1x64xf32, #tpu.memory_space<vmem>>, %arg5: memref<6x64x64xf32, #tpu.memory_space<vmem>>, %arg6: memref<6x1x64xf32, #tpu.memory_space<vmem>>, %arg7: memref<64x9xf32, #tpu.memory_space<vmem>>, %arg8: memref<1x9xf32, #tpu.memory_space<vmem>>, %arg9: memref<4x128xf32, #tpu.memory_space<vmem>>) attributes {dimension_semantics = [], scalar_prefetch = 0 : i64, scratch_operands = 0 : i64, tpu.core_type = #tpu.core_type<tc>} {
    %c0 = arith.constant 0 : index
    %c0_0 = arith.constant 0 : index
    %0 = vector.load %arg0[%c0, %c0_0] : memref<4x32xf32, #tpu.memory_space<vmem>>, vector<4x32xf32>
    %c0_1 = arith.constant 0 : index
    %c0_2 = arith.constant 0 : index
    %1 = vector.load %arg1[%c0_1, %c0_2] : memref<4x32xf32, #tpu.memory_space<vmem>>, vector<4x32xf32>
    %2 = tpu.concatenate %0, %1 in 1 : vector<4x32xf32>, vector<4x32xf32> -> vector<4x64xf32>
    %c0_3 = arith.constant 0 : index
    %c0_4 = arith.constant 0 : index
    %3 = vector.load %arg3[%c0_3, %c0_4] : memref<64x64xf32, #tpu.memory_space<vmem>>, vector<64x64xf32>
    %cst = arith.constant dense<0.000000e+00> : vector<4x64xf32>
    %4 = tpu.matmul %2, %3, %cst {dimension_numbers = #tpu.dot_dimension_numbers<[1], [0], [0], [1], [0, 0, 1, 1], [], []>} : vector<4x64xf32>, vector<64x64xf32>, vector<4x64xf32> -> vector<4x64xf32>
    %c0_5 = arith.constant 0 : index
    %c0_6 = arith.constant 0 : index
    %5 = vector.load %arg4[%c0_5, %c0_6] : memref<1x64xf32, #tpu.memory_space<vmem>>, vector<1x64xf32>
    %6 = vector.broadcast %5 : vector<1x64xf32> to vector<4x64xf32>
    %7 = arith.addf %4, %6 : vector<4x64xf32>
    %8 = math.tanh %7 : vector<4x64xf32>
    %c0_7 = arith.constant 0 : index
    %c0_8 = arith.constant 0 : index
    %c0_9 = arith.constant 0 : index
    %9 = vector.load %arg5[%c0_7, %c0_8, %c0_9] : memref<6x64x64xf32, #tpu.memory_space<vmem>>, vector<1x64x64xf32>
    %10 = vector.shape_cast %9 : vector<1x64x64xf32> to vector<64x64xf32>
    %cst_10 = arith.constant dense<0.000000e+00> : vector<4x64xf32>
    %11 = tpu.matmul %8, %10, %cst_10 {dimension_numbers = #tpu.dot_dimension_numbers<[1], [0], [0], [1], [0, 0, 1, 1], [], []>} : vector<4x64xf32>, vector<64x64xf32>, vector<4x64xf32> -> vector<4x64xf32>
    %c0_11 = arith.constant 0 : index
    %c0_12 = arith.constant 0 : index
    %c0_13 = arith.constant 0 : index
    %12 = vector.load %arg6[%c0_11, %c0_12, %c0_13] : memref<6x1x64xf32, #tpu.memory_space<vmem>>, vector<1x1x64xf32>
    %13 = vector.shape_cast %12 : vector<1x1x64xf32> to vector<1x64xf32>
    %14 = vector.broadcast %13 : vector<1x64xf32> to vector<4x64xf32>
    %15 = arith.addf %11, %14 : vector<4x64xf32>
    %16 = math.tanh %15 : vector<4x64xf32>
    %c1 = arith.constant 1 : index
    %c0_14 = arith.constant 0 : index
    %c0_15 = arith.constant 0 : index
    %17 = vector.load %arg5[%c1, %c0_14, %c0_15] : memref<6x64x64xf32, #tpu.memory_space<vmem>>, vector<1x64x64xf32>
    %18 = vector.shape_cast %17 : vector<1x64x64xf32> to vector<64x64xf32>
    %cst_16 = arith.constant dense<0.000000e+00> : vector<4x64xf32>
    %19 = tpu.matmul %16, %18, %cst_16 {dimension_numbers = #tpu.dot_dimension_numbers<[1], [0], [0], [1], [0, 0, 1, 1], [], []>} : vector<4x64xf32>, vector<64x64xf32>, vector<4x64xf32> -> vector<4x64xf32>
    %c1_17 = arith.constant 1 : index
    %c0_18 = arith.constant 0 : index
    %c0_19 = arith.constant 0 : index
    %20 = vector.load %arg6[%c1_17, %c0_18, %c0_19] : memref<6x1x64xf32, #tpu.memory_space<vmem>>, vector<1x1x64xf32>
    %21 = vector.shape_cast %20 : vector<1x1x64xf32> to vector<1x64xf32>
    %22 = vector.broadcast %21 : vector<1x64xf32> to vector<4x64xf32>
    %23 = arith.addf %19, %22 : vector<4x64xf32>
    %24 = math.tanh %23 : vector<4x64xf32>
    %c2 = arith.constant 2 : index
    %c0_20 = arith.constant 0 : index
    %c0_21 = arith.constant 0 : index
    %25 = vector.load %arg5[%c2, %c0_20, %c0_21] : memref<6x64x64xf32, #tpu.memory_space<vmem>>, vector<1x64x64xf32>
    %26 = vector.shape_cast %25 : vector<1x64x64xf32> to vector<64x64xf32>
    %cst_22 = arith.constant dense<0.000000e+00> : vector<4x64xf32>
    %27 = tpu.matmul %24, %26, %cst_22 {dimension_numbers = #tpu.dot_dimension_numbers<[1], [0], [0], [1], [0, 0, 1, 1], [], []>} : vector<4x64xf32>, vector<64x64xf32>, vector<4x64xf32> -> vector<4x64xf32>
    %c2_23 = arith.constant 2 : index
    %c0_24 = arith.constant 0 : index
    %c0_25 = arith.constant 0 : index
    %28 = vector.load %arg6[%c2_23, %c0_24, %c0_25] : memref<6x1x64xf32, #tpu.memory_space<vmem>>, vector<1x1x64xf32>
    %29 = vector.shape_cast %28 : vector<1x1x64xf32> to vector<1x64xf32>
    %30 = vector.broadcast %29 : vector<1x64xf32> to vector<4x64xf32>
    %31 = arith.addf %27, %30 : vector<4x64xf32>
    %32 = math.tanh %31 : vector<4x64xf32>
    %c3 = arith.constant 3 : index
    %c0_26 = arith.constant 0 : index
    %c0_27 = arith.constant 0 : index
    %33 = vector.load %arg5[%c3, %c0_26, %c0_27] : memref<6x64x64xf32, #tpu.memory_space<vmem>>, vector<1x64x64xf32>
    %34 = vector.shape_cast %33 : vector<1x64x64xf32> to vector<64x64xf32>
    %cst_28 = arith.constant dense<0.000000e+00> : vector<4x64xf32>
    %35 = tpu.matmul %32, %34, %cst_28 {dimension_numbers = #tpu.dot_dimension_numbers<[1], [0], [0], [1], [0, 0, 1, 1], [], []>} : vector<4x64xf32>, vector<64x64xf32>, vector<4x64xf32> -> vector<4x64xf32>
    %c3_29 = arith.constant 3 : index
    %c0_30 = arith.constant 0 : index
    %c0_31 = arith.constant 0 : index
    %36 = vector.load %arg6[%c3_29, %c0_30, %c0_31] : memref<6x1x64xf32, #tpu.memory_space<vmem>>, vector<1x1x64xf32>
    %37 = vector.shape_cast %36 : vector<1x1x64xf32> to vector<1x64xf32>
    %38 = vector.broadcast %37 : vector<1x64xf32> to vector<4x64xf32>
    %39 = arith.addf %35, %38 : vector<4x64xf32>
    %40 = math.tanh %39 : vector<4x64xf32>
    %c4 = arith.constant 4 : index
    %c0_32 = arith.constant 0 : index
    %c0_33 = arith.constant 0 : index
    %41 = vector.load %arg5[%c4, %c0_32, %c0_33] : memref<6x64x64xf32, #tpu.memory_space<vmem>>, vector<1x64x64xf32>
    %42 = vector.shape_cast %41 : vector<1x64x64xf32> to vector<64x64xf32>
    %cst_34 = arith.constant dense<0.000000e+00> : vector<4x64xf32>
    %43 = tpu.matmul %40, %42, %cst_34 {dimension_numbers = #tpu.dot_dimension_numbers<[1], [0], [0], [1], [0, 0, 1, 1], [], []>} : vector<4x64xf32>, vector<64x64xf32>, vector<4x64xf32> -> vector<4x64xf32>
    %c4_35 = arith.constant 4 : index
    %c0_36 = arith.constant 0 : index
    %c0_37 = arith.constant 0 : index
    %44 = vector.load %arg6[%c4_35, %c0_36, %c0_37] : memref<6x1x64xf32, #tpu.memory_space<vmem>>, vector<1x1x64xf32>
    %45 = vector.shape_cast %44 : vector<1x1x64xf32> to vector<1x64xf32>
    %46 = vector.broadcast %45 : vector<1x64xf32> to vector<4x64xf32>
    %47 = arith.addf %43, %46 : vector<4x64xf32>
    %48 = math.tanh %47 : vector<4x64xf32>
    %c5 = arith.constant 5 : index
    %c0_38 = arith.constant 0 : index
    %c0_39 = arith.constant 0 : index
    %49 = vector.load %arg5[%c5, %c0_38, %c0_39] : memref<6x64x64xf32, #tpu.memory_space<vmem>>, vector<1x64x64xf32>
    %50 = vector.shape_cast %49 : vector<1x64x64xf32> to vector<64x64xf32>
    %cst_40 = arith.constant dense<0.000000e+00> : vector<4x64xf32>
    %51 = tpu.matmul %48, %50, %cst_40 {dimension_numbers = #tpu.dot_dimension_numbers<[1], [0], [0], [1], [0, 0, 1, 1], [], []>} : vector<4x64xf32>, vector<64x64xf32>, vector<4x64xf32> -> vector<4x64xf32>
    %c5_41 = arith.constant 5 : index
    %c0_42 = arith.constant 0 : index
    %c0_43 = arith.constant 0 : index
    %52 = vector.load %arg6[%c5_41, %c0_42, %c0_43] : memref<6x1x64xf32, #tpu.memory_space<vmem>>, vector<1x1x64xf32>
    %53 = vector.shape_cast %52 : vector<1x1x64xf32> to vector<1x64xf32>
    %54 = vector.broadcast %53 : vector<1x64xf32> to vector<4x64xf32>
    %55 = arith.addf %51, %54 : vector<4x64xf32>
    %56 = math.tanh %55 : vector<4x64xf32>
    %c0_44 = arith.constant 0 : index
    %c0_45 = arith.constant 0 : index
    %57 = vector.load %arg7[%c0_44, %c0_45] : memref<64x9xf32, #tpu.memory_space<vmem>>, vector<64x9xf32>
    %cst_46 = arith.constant dense<0.000000e+00> : vector<4x9xf32>
    %58 = tpu.matmul %56, %57, %cst_46 {dimension_numbers = #tpu.dot_dimension_numbers<[1], [0], [0], [1], [0, 0, 1, 1], [], []>} : vector<4x64xf32>, vector<64x9xf32>, vector<4x9xf32> -> vector<4x9xf32>
    %c0_47 = arith.constant 0 : index
    %c0_48 = arith.constant 0 : index
    %59 = vector.load %arg8[%c0_47, %c0_48] : memref<1x9xf32, #tpu.memory_space<vmem>>, vector<1x9xf32>
    %60 = vector.broadcast %59 : vector<1x9xf32> to vector<4x9xf32>
    %61 = arith.addf %58, %60 : vector<4x9xf32>
    %62 = vector.extract_strided_slice %61 {offsets = [0, 0], sizes = [4, 4], strides = [1, 1]} : vector<4x9xf32> to vector<4x4xf32>
    %63 = vector.extract_strided_slice %61 {offsets = [0, 4], sizes = [4, 4], strides = [1, 1]} : vector<4x9xf32> to vector<4x4xf32>
    %64 = vector.extract_strided_slice %61 {offsets = [0, 8], sizes = [4, 1], strides = [1, 1]} : vector<4x9xf32> to vector<4x1xf32>
    %cst_49 = arith.constant 1.000000e+00 : f32
    %65 = vector.broadcast %cst_49 : f32 to vector<4x4xf32>
    %66 = arith.addf %63, %65 : vector<4x4xf32>
    %cst_50 = arith.constant 5.000000e-01 : f32
    %67 = vector.broadcast %cst_50 : f32 to vector<4x4xf32>
    %68 = arith.mulf %66, %67 : vector<4x4xf32>
    %cst_51 = arith.constant 9.99999993E-9 : f32
    %69 = vector.broadcast %cst_51 : f32 to vector<4x4xf32>
    %70 = arith.maximumf %68, %69 : vector<4x4xf32>
    %71 = math.sqrt %70 : vector<4x4xf32>
    %72 = tpu.reciprocal %70 : vector<4x4xf32> -> vector<4x4xf32>
    %c0_52 = arith.constant 0 : index
    %c0_53 = arith.constant 0 : index
    %73 = vector.load %arg2[%c0_52, %c0_53] : memref<4x4xf32, #tpu.memory_space<vmem>>, vector<4x4xf32>
    %74 = arith.mulf %71, %73 : vector<4x4xf32>
    %75 = arith.addf %62, %74 : vector<4x4xf32>
    %76 = arith.subf %75, %62 : vector<4x4xf32>
    %77 = arith.mulf %76, %76 : vector<4x4xf32>
    %78 = arith.mulf %77, %72 : vector<4x4xf32>
    %cst_54 = arith.constant dense<0.000000e+00> : vector<4xf32>
    %79 = vector.multi_reduction <add>, %78, %cst_54 [1] : vector<4x4xf32> to vector<4xf32>
    %80 = vector.shape_cast %79 : vector<4xf32> to vector<4x1xf32>
    %81 = math.log %70 : vector<4x4xf32>
    %cst_55 = arith.constant dense<0.000000e+00> : vector<4xf32>
    %82 = vector.multi_reduction <add>, %81, %cst_55 [1] : vector<4x4xf32> to vector<4xf32>
    %83 = vector.shape_cast %82 : vector<4xf32> to vector<4x1xf32>
    %84 = arith.addf %80, %83 : vector<4x1xf32>
    %cst_56 = arith.constant 7.35150814 : f32
    %85 = vector.broadcast %cst_56 : f32 to vector<4x1xf32>
    %86 = arith.addf %84, %85 : vector<4x1xf32>
    %cst_57 = arith.constant -5.000000e-01 : f32
    %87 = vector.broadcast %cst_57 : f32 to vector<4x1xf32>
    %88 = arith.mulf %87, %86 : vector<4x1xf32>
    %cst_58 = arith.constant 5.000000e-01 : f32
    %89 = vector.broadcast %cst_58 : f32 to vector<4x1xf32>
    %90 = arith.mulf %89, %83 : vector<4x1xf32>
    %cst_59 = arith.constant 5.67575407 : f32
    %91 = vector.broadcast %cst_59 : f32 to vector<4x1xf32>
    %92 = arith.addf %91, %90 : vector<4x1xf32>
    %cst_60 = arith.constant 0.000000e+00 : f32
    %93 = vector.broadcast %cst_60 : f32 to vector<4x113xf32>
    %94 = tpu.concatenate %75, %62, %70, %88, %92, %64, %93 in 1 : vector<4x4xf32>, vector<4x4xf32>, vector<4x4xf32>, vector<4x1xf32>, vector<4x1xf32>, vector<4x1xf32>, vector<4x113xf32> -> vector<4x128xf32>
    %c0_61 = arith.constant 0 : index
    %c0_62 = arith.constant 0 : index
    %95 = vector.load %arg9[%c0_61, %c0_62] : memref<4x128xf32, #tpu.memory_space<vmem>>, vector<4x128xf32>
    tpu.vector_store %arg9[%c0_61, %c0_62], %94 {strides = array<i32>} : memref<4x128xf32, #tpu.memory_space<vmem>>, vector<4x128xf32>,
    return
  }
}

</mosaic_0001>

<bundles_post_ra>
// kernel: tpu_custom_call.1
= control target key start
LH: loop header
LB: loop body
LE: loop exit
PB: predicated region body
PF: predicated region fallthrough
CT: control target
= control target key end

     0   :  { %14 = vsyncpa [#allocation3], 0  ;;  %s718_s0 = inlined_call_operand.vmem [shape: f32[4,32], index: 0, kind: input, shape index: {}]   ;;  %s719_s1 = inlined_call_operand.vmem [shape: f32[4,32], index: 1, kind: input, shape index: {}]   ;;  %s720_s2 = inlined_call_operand.vmem [shape: f32[4,4], index: 2, kind: input, shape index: {}]   ;;  %s721_s3 = inlined_call_operand.vmem [shape: f32[64,64], index: 3, kind: input, shape index: {}]   ;;  %s722_s4 = inlined_call_operand.vmem [shape: f32[1,64], index: 4, kind: input, shape index: {}]   ;;  %s723_s5 = inlined_call_operand.hbm [shape: f32[6,64,64], index: 5, kind: input, shape index: {}]   ;;  %s724_s6 = inlined_call_operand.vmem [shape: f32[6,1,64], index: 6, kind: input, shape index: {}]   ;;  %s725_s7 = inlined_call_operand.vmem [shape: f32[64,9], index: 7, kind: input, shape index: {}]   ;;  %s726_s8 = inlined_call_operand.vmem [shape: f32[1,9], index: 8, kind: input, shape index: {}]   ;;  %s727_s9 = inlined_call_operand.hbm [shape: f32[4,128], index: 9, kind: output, shape index: {}]  }
   0x1   :  { %15 = vsyncpa [#allocation4], 0  ;;  %s30_s11 = sshll.u32 %s723_s5, 4  ;;  %s562_s12 = smov [#allocation2]   ;;  %s31_s11 = int_to_ptr.hbm [resolvable:$true] %s30_s11 }
   0x2   :  { %s32_s13 = sshll.u32 %s562_s12, 4  ;;  %s563_s14 = smov 128   ;;  %s33_s13 = int_to_ptr.vmem [resolvable:$true] %s32_s13 }
   0x3   :  { %s564_s15 = smov 8  }
   0x4   :  { %38 = dma.hbm_to_vmem [thread:$0]  %s31_s11, 6144, %s33_s13, [#allocation3], %s563_s14, %s563_s14, %s564_s15  }
   0x5   :  { %558 = dma.done.wait [#allocation3], 6144  }
   0x6   :  { %559 = vsyncadd [#allocation3], 4294961152  ;;  %v50_v0 = vld [vmem:[%s719_s1] sm:$0xf]  ;;  %v64_v1 = vld [vmem:[%s721_s3 + $0x38] sm:$0xff]  ;;  %s565_s5 = smov 32  }
   0x7   :  { %v63_v2 = vld [vmem:[%s721_s3 + $0x30] sm:$0xff]  ;;  %52 = vrot.lane.b32.xlu0 %v50_v0, %s565_s5  ;;  %81 = vmatpush.msra.mxu0 %v64_v1  ;;  %v62_v3 = vld [vmem:[%s721_s3 + $0x28] sm:$0xff]  ;;  %v61_v4 = vld [vmem:[%s721_s3 + $0x20] sm:$0xff]  ;;  %vm55_vm0 = vcmask 261120   ;;  %vm69_vm1 = vcmask 523264   ;;  %s566_s15 = smov 4  }
   0x8   :  { %v60_v5 = vld [vmem:[%s721_s3 + $0x18] sm:$0xff]  ;;  %v59_v6 = vld [vmem:[%s721_s3 + $0x10] sm:$0xff]  ;;  %v58_v7 = vld [vmem:[%s721_s3 + $0x8] sm:$0xff]  ;;  %vm402_vm8 = vcmask 27648   ;;  %vm431_vm9 = vcmask 31744   ;;  %vm433_vm10 = vcmask 64512  }
   0x9   :  { %82 = vmatpush.msra.mxu0 %v63_v2  ;;  %v57_v8 = vld [vmem:[%s721_s3] sm:$0xff]  ;;  %v101_v9 = vld [vmem:[#allocation2 + $0x38] sm:$0xff]  ;;  %v100_v10 = vld [vmem:[#allocation2 + $0x30] sm:$0xff]  ;;  %vm435_vm11 = vcmask 97280   ;;  %vm437_vm12 = vcmask 105472   ;;  %vm439_vm13 = vcmask 113664  }
   0xa   :  { %117 = vmatpush.msra.mxu1 %v101_v9  ;;  %v99_v11 = vld [vmem:[#allocation2 + $0x28] sm:$0xff]  ;;  %v49_v12 = vld [vmem:[%s718_s0] sm:$0xf]  ;;  %v97_v16 = vld [vmem:[#allocation2 + $0x18] sm:$0xff]  ;;  %s451_s5 = sshll.u32 %s727_s9, 4  ;;  %vm441_vm14 = vcmask 121856   ;;  %s452_s5 = int_to_ptr.hbm [resolvable:$true] %s451_s5 }
   0xb   :  { %83 = vmatpush.msra.mxu0 %v62_v3  ;;  %v98_v15 = vld [vmem:[#allocation2 + $0x20] sm:$0xff]  ;;  %v96_v17 = vld [vmem:[#allocation2 + $0x10] sm:$0xff]  ;;  %v95_v18 = vld [vmem:[#allocation2 + $0x8] sm:$0xff] }
   0xc   :  { %118 = vmatpush.msra.mxu1 %v100_v10  ;;  %v94_v19 = vld [vmem:[#allocation2] sm:$0xff]  ;;  %v138_v20 = vld [vmem:[#allocation2 + $0x78] sm:$0xff]  ;;  %v137_v21 = vld [vmem:[#allocation2 + $0x70] sm:$0xff] }
   0xd   :  { %84 = vmatpush.msra.mxu0 %v61_v4  ;;  %155 = vmatpush.msra.mxu2 %v138_v20  ;;  %v136_v22 = vld [vmem:[#allocation2 + $0x68] sm:$0xff]  ;;  %v482_v23 = vld [vmem:[%s722_s4] ss:$0 sm:$0xff]  ;;  %v134_v28 = vld [vmem:[#allocation2 + $0x58] sm:$0xff] }
   0xe   :  { %119 = vmatpush.msra.mxu1 %v99_v11  ;;  %v135_v27 = vld [vmem:[#allocation2 + $0x60] sm:$0xff]  ;;  %v133_v29 = vld [vmem:[#allocation2 + $0x50] sm:$0xff]  ;;  %v132_v30 = vld [vmem:[#allocation2 + $0x48] sm:$0xff] }
   0xf   :  { %85 = vmatpush.msra.mxu0 %v60_v5  ;;  %156 = vmatpush.msra.mxu2 %v137_v21  ;;  %v131_v31 = vld [vmem:[#allocation2 + $0x40] sm:$0xff]  ;;  %v176_v32 = vld [vmem:[#allocation2 + $0xb8] sm:$0xff]  ;;  %v175_v33 = vld [vmem:[#allocation2 + $0xb0] sm:$0xff] }
  0x10   :  { %120 = vmatpush.msra.mxu1 %v98_v15  ;;  %193 = vmatpush.msra.mxu3 %v176_v32  ;;  %v174_v34 = vld [vmem:[#allocation2 + $0xa8] sm:$0xff]  ;;  %v483_v35 = vld [vmem:[%s724_s6] ss:$0 sm:$0xff]  ;;  %v172_v40 = vld [vmem:[#allocation2 + $0x98] sm:$0xff] }
  0x11   :  { %86 = vmatpush.msra.mxu0 %v59_v6  ;;  %157 = vmatpush.msra.mxu2 %v136_v22  ;;  %v173_v39 = vld [vmem:[#allocation2 + $0xa0] sm:$0xff]  ;;  %v171_v41 = vld [vmem:[#allocation2 + $0x90] sm:$0xff]  ;;  %v170_v42 = vld [vmem:[#allocation2 + $0x88] sm:$0xff] }
  0x12   :  { %121 = vmatpush.msra.mxu1 %v97_v16  ;;  %194 = vmatpush.msra.mxu3 %v175_v33  ;;  %v169_v43 = vld [vmem:[#allocation2 + $0x80] sm:$0xff]  ;;  %v214_v44 = vld [vmem:[#allocation2 + $0xf8] sm:$0xff]  ;;  %v213_v45 = vld [vmem:[#allocation2 + $0xf0] sm:$0xff] }
  0x13   :  { %87 = vmatpush.msra.mxu0 %v58_v7  ;;  %158 = vmatpush.msra.mxu2 %v135_v27  ;;  %v212_v46 = vld [vmem:[#allocation2 + $0xe8] sm:$0xff]  ;;  %v484_v47 = vld [vmem:[%s724_s6 + $0x1] ss:$0 sm:$0xff]  ;;  %v210_v52 = vld [vmem:[#allocation2 + $0xd8] sm:$0xff] }
  0x14   :  { %122 = vmatpush.msra.mxu1 %v96_v17  ;;  %195 = vmatpush.msra.mxu3 %v174_v34  ;;  %v211_v51 = vld [vmem:[#allocation2 + $0xe0] sm:$0xff]  ;;  %v209_v53 = vld [vmem:[#allocation2 + $0xd0] sm:$0xff]  ;;  %v208_v54 = vld [vmem:[#allocation2 + $0xc8] sm:$0xff] }
  0x15   :  { %88 = vmatpush.msra.mxu0 %v57_v8  ;;  %159 = vmatpush.msra.mxu2 %v134_v28  ;;  %v207_v55 = vld [vmem:[#allocation2 + $0xc0] sm:$0xff]  ;;  %v252_v56 = vld [vmem:[#allocation2 + $0x138] sm:$0xff]  ;;  %v251_v57 = vld [vmem:[#allocation2 + $0x130] sm:$0xff] }
  0x16   :  { %123 = vmatpush.msra.mxu1 %v95_v18  ;;  %196 = vmatpush.msra.mxu3 %v173_v39  ;;  %v250_v58 = vld [vmem:[#allocation2 + $0x128] sm:$0xff]  ;;  %v485_v59 = vld [vmem:[%s724_s6 + $0x2] ss:$0 sm:$0xff]  ;;  %v248_v0 = vld [vmem:[#allocation2 + $0x118] sm:$0xff] }
  0x17   :  { %160 = vmatpush.msra.mxu2 %v133_v29  ;;  %231 = vmatpush.msrb.mxu0 %v214_v44  ;;  %v249_v63 = vld [vmem:[#allocation2 + $0x120] sm:$0xff]  ;;  %v247_v1 = vld [vmem:[#allocation2 + $0x110] sm:$0xff]  ;;  %v246_v2 = vld [vmem:[#allocation2 + $0x108] sm:$0xff] }
  0x18   :  { %124 = vmatpush.msra.mxu1 %v94_v19  ;;  %197 = vmatpush.msra.mxu3 %v172_v40  ;;  %v245_v3 = vld [vmem:[#allocation2 + $0x100] sm:$0xff]  ;;  %v290_v4 = vld [vmem:[#allocation2 + $0x178] sm:$0xff]  ;;  %v289_v5 = vld [vmem:[#allocation2 + $0x170] sm:$0xff] }
  0x19   :  { %161 = vmatpush.msra.mxu2 %v132_v30  ;;  %232 = vmatpush.msrb.mxu0 %v213_v45  ;;  %v288_v6 = vld [vmem:[#allocation2 + $0x168] sm:$0xff]  ;;  %v486_v7 = vld [vmem:[%s724_s6 + $0x3] ss:$0 sm:$0xff]  ;;  %v327_v16 = vld [vmem:[%s725_s7 + $0x38] sm:$0xff] }
  0x1a   :  { %198 = vmatpush.msra.mxu3 %v171_v41  ;;  %269 = vmatpush.msrb.mxu1 %v252_v56  ;;  %v287_v11 = vld [vmem:[#allocation2 + $0x160] sm:$0xff]  ;;  %v326_v17 = vld [vmem:[%s725_s7 + $0x30] sm:$0xff]  ;;  %v325_v18 = vld [vmem:[%s725_s7 + $0x28] sm:$0xff] }
  0x1b   :  { %162 = vmatpush.msra.mxu2 %v131_v31  ;;  %233 = vmatpush.msrb.mxu0 %v212_v46  ;;  %v283_v15 = vld [vmem:[#allocation2 + $0x140] sm:$0xff] }
  0x1c   :  { %199 = vmatpush.msra.mxu3 %v170_v42  ;;  %270 = vmatpush.msrb.mxu1 %v251_v57  ;;  %v487_v19 = vld [vmem:[%s724_s6 + $0x4] ss:$0 sm:$0xff]  ;;  %v384_v28 = vld [vmem:[%s720_s2] sm:$0xf]  ;;  %v488_v29 = vld [vmem:[%s724_s6 + $0x5] ss:$0 sm:$0xff] }
  0x1d   :  { %234 = vmatpush.msrb.mxu0 %v211_v51  ;;  %307 = vmatpush.msrb.mxu2 %v290_v4  ;;  %v320_v27 = vld [vmem:[%s725_s7] sm:$0xff]  ;;  %s567_s2 = smov 124   ;;  %s568_s6 = smov 6  }
  0x1e   :  { %200 = vmatpush.msra.mxu3 %v169_v43  ;;  %271 = vmatpush.msrb.mxu1 %v250_v58  ;;  %v489_v33 = vld [vmem:[%s726_s8] ss:$0 sm:$0xff]  ;;  %s569_s8 = smov [#allocation5]  }
  0x1f   :  { %235 = vmatpush.msrb.mxu0 %v210_v52  ;;  %308 = vmatpush.msrb.mxu2 %v289_v5  ;;  %s449_s19 = sshll.u32 %s569_s8, 4  ;;  %s450_s19 = int_to_ptr.vmem [resolvable:$true] %s449_s19 }
  0x20   :  { %272 = vmatpush.msrb.mxu1 %v249_v63  ;;  %343 = vmatpush.msrb.mxu3 %v327_v16 }
  0x21   :  { %236 = vmatpush.msrb.mxu0 %v209_v53  ;;  %309 = vmatpush.msrb.mxu2 %v288_v6 }
  0x22   :  { %273 = vmatpush.msrb.mxu1 %v248_v0  ;;  %344 = vmatpush.msrb.mxu3 %v326_v17 }
  0x23   :  { %237 = vmatpush.msrb.mxu0 %v208_v54  ;;  %310 = vmatpush.msrb.mxu2 %v287_v11 }
  0x24   :  { %274 = vmatpush.msrb.mxu1 %v247_v1  ;;  %345 = vmatpush.msrb.mxu3 %v325_v18 }
  0x25   :  { %238 = vmatpush.msrb.mxu0 %v207_v55  ;;  %386 = vrot.lane.b32.xlu0 %v384_v28, %s566_s15 }
  0x26   :  { %275 = vmatpush.msrb.mxu1 %v246_v2 }
  0x28   :  { %276 = vmatpush.msrb.mxu1 %v245_v3 }
  0x79   :  { %v53_v13 = vpop.permute.xlu0 %52 }
  0x7a   :  { %v56_v14 = vsel %vm55_vm0, %v49_v12, %v53_v13  ;;  %v286_v12 = vld [vmem:[#allocation2 + $0x158] sm:$0xff]  ;;  %v285_v13 = vld [vmem:[#allocation2 + $0x150] sm:$0xff] }
  0x7b   :  { %461 = vmatmul.msk.f32.vlgmr.msra.gmra.mxu0 %vm69_vm1, %v56_v14  ;;  %311 = vmatpush.msrb.mxu2 %v286_v12  ;;  %v284_v14 = vld [vmem:[#allocation2 + $0x148] sm:$0xff] }
  0x7d   :  { %312 = vmatpush.msrb.mxu2 %v285_v13 }
  0x7f   :  { %313 = vmatpush.msrb.mxu2 %v284_v14 }
  0x81   :  { %314 = vmatpush.msrb.mxu2 %v283_v15 }
  0x97   :  { %v387_v51 = vpop.permute.xlu0 %386 }
  0xf8   :  { %v90_v24 = vpop.f32.mrf.mxu0 }
  0xf9   :  { %v91_v25 = vadd.f32 %v482_v23, %v90_v24  ;;  %v324_v23 = vld [vmem:[%s725_s7 + $0x20] sm:$0xff]  ;;  %v323_v24 = vld [vmem:[%s725_s7 + $0x18] sm:$0xff] }
  0xfa   :  { %346 = vmatpush.msrb.mxu3 %v324_v23 }
  0xfb   :  { %490 = vtanh.f32 %v91_v25  ;;  %v322_v25 = vld [vmem:[%s725_s7 + $0x10] sm:$0xff] }
  0xfc   :  { %347 = vmatpush.msrb.mxu3 %v323_v24 }
  0xfe   :  { %348 = vmatpush.msrb.mxu3 %v322_v25 }
 0x101   :  { %v491_v26 = vpop.eup %490 }
 0x102   :  { %462 = vmatmul.msk.f32.vlgmr.msra.gmra.mxu1 %vm69_vm1, %v491_v26  ;;  %v321_v26 = vld [vmem:[%s725_s7 + $0x8] sm:$0xff] }
 0x103   :  { %349 = vmatpush.msrb.mxu3 %v321_v26 }
 0x105   :  { %350 = vmatpush.msrb.mxu3 %v320_v27 }
 0x17f   :  { %v126_v36 = vpop.f32.mrf.mxu1 }
 0x180   :  { %v127_v37 = vadd.f32 %v483_v35, %v126_v36 }
 0x182   :  { %492 = vtanh.f32 %v127_v37 }
 0x188   :  { %v493_v38 = vpop.eup %492 }
 0x189   :  { %464 = vmatmul.msk.f32.vlgmr.msra.gmra.mxu2 %vm69_vm1, %v493_v38 }
 0x20c   :  { %v164_v48 = vpop.f32.mrf.mxu2 }
 0x20d   :  { %v165_v49 = vadd.f32 %v484_v47, %v164_v48 }
 0x20f   :  { %494 = vtanh.f32 %v165_v49 }
 0x215   :  { %v495_v50 = vpop.eup %494 }
 0x216   :  { %466 = vmatmul.msk.f32.vlgmr.msra.gmra.mxu3 %vm69_vm1, %v495_v50 }
 0x299   :  { %v202_v60 = vpop.f32.mrf.mxu3 }
 0x29a   :  { %v203_v61 = vadd.f32 %v485_v59, %v202_v60 }
 0x29c   :  { %496 = vtanh.f32 %v203_v61 }
 0x2a2   :  { %v497_v62 = vpop.eup %496 }
 0x2a3   :  { %468 = vmatmul.msk.f32.vlgmr.msrb.gmra.mxu0 %vm69_vm1, %v497_v62 }
 0x320   :  { %v240_v8 = vpop.f32.mrf.mxu0 }
 0x321   :  { %v241_v9 = vadd.f32 %v486_v7, %v240_v8 }
 0x323   :  { %498 = vtanh.f32 %v241_v9 }
 0x329   :  { %v499_v10 = vpop.eup %498 }
 0x32a   :  { %470 = vmatmul.msk.f32.vlgmr.msrb.gmra.mxu1 %vm69_vm1, %v499_v10 }
 0x3a7   :  { %v278_v20 = vpop.f32.mrf.mxu1 }
 0x3a8   :  { %v279_v21 = vadd.f32 %v487_v19, %v278_v20 }
 0x3aa   :  { %500 = vtanh.f32 %v279_v21 }
 0x3b0   :  { %v501_v22 = vpop.eup %500 }
 0x3b1   :  { %472 = vmatmul.msk.f32.vlgmr.msrb.gmra.mxu2 %vm69_vm1, %v501_v22 }
 0x434   :  { %v316_v30 = vpop.f32.mrf.mxu2 }
 0x435   :  { %v317_v31 = vadd.f32 %v488_v29, %v316_v30 }
 0x437   :  { %502 = vtanh.f32 %v317_v31 }
 0x43d   :  { %v503_v32 = vpop.eup %502 }
 0x43e   :  { %473 = vmatmul.msk.f32.vlgmr.msrb.gmra.mxu3 %vm69_vm1, %v503_v32 }
 0x4c1   :  { %v352_v34 = vpop.f32.mrf.mxu3 }
 0x4c2   :  { %v353_v35 = vadd.f32 %v489_v33, %v352_v34 }
 0x4c4   :  { %v355_v36 = vadd.f32 1.0, %v353_v35 }
 0x4c6   :  { %v356_v37 = vmul.f32 0.5, %v355_v36 }
 0x4c8   :  { %v357_v38 = vmax.f32 %v356_v37, 1e-08 }
 0x4ca   :  { %504 = vlog2.f32 %v357_v38  ;;  %vm365_vm2 = vcmp.eq.f32.partialorder %v357_v38, inf  ;;  %v368_v52 = vand.u32 2147483648, %v357_v38  ;;  %vm367_vm3 = vcmp.eq.f32.partialorder %v357_v38, 0.0 }
 0x4cb   :  { %506 = vrsqrt.f32 %v357_v38  ;;  %vm375_vm5 = vweird.f32 %v357_v38  ;;  %v379_v58 = vand.u32 2147483647, %v357_v38 }
 0x4cc   :  { %508 = vrcp.f32 %v357_v38  ;;  %v382_v60 = vor.u32 1.1754944e-38, %v368_v52 }
 0x4cd   :  { %vm380_vm7 = vcmp.eq.f32.partialorder %v379_v58, 8.507059e+37 }
 0x4d0   :  { %v505_v39 = vpop.eup %504 }
 0x4d1   :  { %v507_v40 = vpop.eup %506  ;;  %v407_v41 = vmul.f32 0.6931472, %v505_v39 }
 0x4d2   :  { %v359_v42 = vmul.f32 %v507_v40, %v357_v38  ;;  %v509_v43 = vpop.eup %508 }
 0x4d3   :  { %409 = vrot.lane.b32.xlu2 %v407_v41, %s567_s2  ;;  %v371_v46 = vmul.f32 %v509_v43, %v357_v38  ;;  %vm376_vm4 = vweird.f32 %v509_v43 }
 0x4d4   :  { %v360_v44 = vmul.f32 %v507_v40, %v359_v42  ;;  %vm377_vm6 = vmor %vm375_vm5, %vm376_vm4 }
 0x4d5   :  { %v372_v49 = vsub.f32 1.0, %v371_v46 }
 0x4d6   :  { %v361_v45 = vmul.f32 0.5, %v360_v44 }
 0x4d7   :  { %v373_v54 = vmul.f32 %v509_v43, %v372_v49 }
 0x4d8   :  { %v362_v47 = vsub.f32 1.5, %v361_v45 }
 0x4d9   :  { %v374_v57 = vadd.f32 %v509_v43, %v373_v54 }
 0x4da   :  { %v363_v48 = vmul.f32 %v507_v40, %v362_v47 }
 0x4db   :  { %v378_v59 = vsel %vm377_vm6, %v509_v43, %v374_v57 }
 0x4dc   :  { %v364_v50 = vmul.f32 %v363_v48, %v357_v38  ;;  %v383_v61 = vsel %vm380_vm7, %v382_v60, %v378_v59 }
 0x4de   :  { %v366_v53 = vsel %vm365_vm2, %v357_v38, %v364_v50 }
 0x4df   :  { %v369_v55 = vsel %vm367_vm3, %v368_v52, %v366_v53 }
 0x4e0   :  { %v389_v56 = vmul.f32 %v387_v51, %v369_v55 }
 0x4e2   :  { %391 = vrot.lane.b32.xlu1 %v389_v56, %s567_s2 }
 0x4ea   :  { %398 = vrot.lane.b32.xlu1 %v383_v61, %s567_s2 }
 0x4f2   :  { %421 = vrot.lane.b32.xlu1 %v353_v35, %s566_s15 }
 0x4fa   :  { %425 = vrot.lane.b32.xlu1 %v357_v38, %s566_s15 }
 0x502   :  { %428 = vrot.lane.b32.xlu1 %v353_v35, %s568_s6 }
 0x52d   :  { %v410_v62 = vpop.permute.xlu2 %409 }
 0x52e   :  { %v412_v63 = vsel %vm402_vm8, %v410_v62, 0.0 }
 0x52f   :  { %413 = vadd.xlane.f32.xlu0 %v412_v63 }
 0x554   :  { %v392_v0 = vpop.permute.xlu1 %391 }
 0x555   :  { %v394_v1 = vadd.f32 %v392_v0, %v353_v35 }
 0x557   :  { %v395_v2 = vsub.f32 %v394_v1, %v353_v35 }
 0x559   :  { %v396_v3 = vmul.f32 %v395_v2, %v395_v2 }
 0x55c   :  { %v399_v4 = vpop.permute.xlu1 %398 }
 0x55d   :  { %v401_v5 = vmul.f32 %v399_v4, %v396_v3 }
 0x55f   :  { %v403_v6 = vsel %vm402_vm8, %v401_v5, 0.0 }
 0x560   :  { %404 = vadd.xlane.f32.xlu2 %v403_v6 }
 0x564   :  { %v422_v7 = vpop.permute.xlu1 %421 }
 0x565   :  { %v432_v14 = vsel %vm431_vm9, %v394_v1, %v422_v7 }
 0x56c   :  { %v426_v8 = vpop.permute.xlu1 %425 }
 0x56d   :  { %v434_v16 = vsel %vm433_vm10, %v432_v14, %v426_v8 }
 0x574   :  { %v429_v19 = vpop.permute.xlu1 %428 }
 0x5a2   :  { %v414_v9 = vpop.xlane.xlu0 %413 }
 0x5a3   :  { %v418_v12 = vmul.f32 0.5, %v414_v9 }
 0x5a5   :  { %v419_v17 = vadd.f32 5.675754, %v418_v12 }
 0x5d3   :  { %v405_v10 = vpop.xlane.xlu2 %404 }
 0x5d4   :  { %v415_v11 = vadd.f32 %v414_v9, %v405_v10 }
 0x5d6   :  { %v416_v13 = vadd.f32 7.351508, %v415_v11 }
 0x5d8   :  { %v417_v15 = vmul.f32 -0.5, %v416_v13 }
 0x5da   :  { %v436_v18 = vsel %vm435_vm11, %v434_v16, %v417_v15 }
 0x5db   :  { %v438_v20 = vsel %vm437_vm12, %v436_v18, %v419_v17 }
 0x5dc   :  { %v440_v21 = vsel %vm439_vm13, %v438_v20, %v429_v19 }
 0x5dd   :  { %v442_v22 = vsel %vm441_vm14, %v440_v21, 0.0 }
 0x5de   :  { %443 = vst [vmem:[#allocation5] sm:$0xf] %v442_v22 }
 0x5df   :  { %454 = dma.vmem_to_hbm [thread:$0]  %s450_s19, 64, %s452_s5, [#allocation4]  }
 0x5e0   :  { %560 = dma.done.wait [#allocation4], 64  }
 0x5e1   :  { %561 = vsyncadd [#allocation4], 4294967232 }
 0x5e2   :  { %459 = vsyncpa [#allocation3], 1 }
 0x5e3   :  { %460 = vsyncpa [#allocation4], 1 }

</bundles_post_ra>
